<compile_context>
chip_gen: v7x
topology: tpu7x:2x2x1
jax: 0.10.0
libtpu: 0.0.40
codegen_flags: <defaults>
</compile_context>

<pallas_src>
import jax
import jax.numpy as jnp
from jax.experimental import pallas as pl
from jax.experimental.pallas import tpu as pltpu

_LANES = 128
_SUBLANES = 8


def _round_up(x, m):
    return (x + m - 1) // m * m


def _cdiv(a, b):
    return -(-a // b)


def _make_kernel(block_rows, total_rows, needs_row_mask):
    """Build the per-block kernel with static tiling constants baked in."""

    def kernel(delta_ref, pred_ref, target_ref, out_ref):
        delta = delta_ref[0]                      # scalar read from SMEM, once
        p = pred_ref[...].astype(jnp.float32)
        t = target_ref[...].astype(jnp.float32)
        r = jnp.abs(p - t)
        # Branch-free Huber, identical to
        #   where(r < delta, 0.5*r**2, delta*(r - 0.5*delta))   for every delta.
        c = jnp.minimum(r, delta)
        loss = c * (r - 0.5 * c)
        if needs_row_mask:
            # Ragged last block: rows past `total_rows` were never DMA'd (their
            # VMEM contents are unspecified), so select them to exactly 0 before
            # the reduction. jnp.where (not multiply) so NaN garbage cannot leak.
            i = pl.program_id(0)
            limit = total_rows - i * block_rows
            row_ids = jax.lax.broadcasted_iota(jnp.int32, (block_rows, _LANES), 0)
            loss = jnp.where(row_ids < limit, loss, 0.0)
        # Fold rows onto the 8 sublanes: pure VPU adds, no cross-lane/XLU work.
        out_ref[...] = loss.reshape(block_rows // _SUBLANES, _SUBLANES, _LANES).sum(axis=0)

    return kernel


def adaptive_huber_loss(pred, target, delta=1.0, block_rows=2048):
    """Mean Huber loss over all elements of pred/target (same shape, any dtype)."""
    assert pred.shape == target.shape
    n = int(pred.size)
    assert n > 0
    delta_f = jnp.asarray(delta, jnp.float32)
    delta_arr = delta_f.reshape(1)

    # Flatten to (rows, 128); only pad the tiny tail up to a multiple of 8*128
    # elements (no copy at all when n is already 1024-aligned).
    rows = _cdiv(n, _LANES)
    rows_padded = _round_up(rows, _SUBLANES)
    padded_n = rows_padded * _LANES
    n_pad = padded_n - n

    def _prep(x):
        x = x.reshape(-1)
        if n_pad:
            x = jnp.pad(x, (0, n_pad))
        return x.reshape(rows_padded, _LANES)

    p2 = _prep(pred)
    t2 = _prep(target)

    # ---- tile-size selection ----------------------------------------------
    # Cap at 4096 rows (2 MiB f32/input tile, 8 MiB double-buffered inputs) so the
    # default scoped-VMEM limit on v5e is never exceeded.
    block_rows = max(_SUBLANES, min(int(block_rows), 4096))
    if rows_padded <= block_rows:
        # Single block covering exactly the (8-row aligned) array.
        block_rows = rows_padded
    else:
        # Prefer >= ~8 grid steps (v7x megacore load balance) but keep tiles at
        # >= 512 rows (~85% of HBM roofline per measurements), rounded to 32 rows
        # so 8-bit dtypes would also get a legal layout.
        per8 = _round_up(_cdiv(rows_padded, 8), 32)
        block_rows = min(block_rows, max(512, per8))
        block_rows = _round_up(block_rows, 32)
        block_rows = min(block_rows, rows_padded)
    num_blocks = _cdiv(rows_padded, block_rows)
    needs_row_mask = (rows_padded % block_rows) != 0

    in_bytes = padded_n * (
        jnp.dtype(pred.dtype).itemsize + jnp.dtype(target.dtype).itemsize
    )
    out_bytes = num_blocks * _SUBLANES * _LANES * 4
    cost = pl.CostEstimate(
        flops=7 * padded_n,
        transcendentals=0,
        bytes_accessed=in_bytes + out_bytes + 4,
    )

    partials = pl.pallas_call(
        _make_kernel(block_rows, rows_padded, needs_row_mask),
        out_shape=jax.ShapeDtypeStruct((num_blocks * _SUBLANES, _LANES), jnp.float32),
        grid_spec=pltpu.PrefetchScalarGridSpec(
            num_scalar_prefetch=0,
            grid=(num_blocks,),
            in_specs=[
                pl.BlockSpec(memory_space=pltpu.MemorySpace.SMEM),       # delta (1,)
                pl.BlockSpec((block_rows, _LANES), lambda i: (i, 0)),    # pred tile
                pl.BlockSpec((block_rows, _LANES), lambda i: (i, 0)),    # target tile
            ],
            out_specs=pl.BlockSpec((_SUBLANES, _LANES), lambda i: (i, 0)),
        ),
        compiler_params=pltpu.CompilerParams(
            dimension_semantics=("parallel",),   # independent blocks -> megacore on v7x
        ),
        cost_estimate=cost,
    )(delta_arr, p2, t2)

    total = jnp.sum(partials, dtype=jnp.float32)
    if n_pad:
        # Explicit zero-padded tail elements (pred == target == 0) contribute
        # -0.5*min(0, delta)^2 each (0 for delta >= 0); remove that exactly.
        c_pad = jnp.minimum(jnp.float32(0.0), delta_f)
        total = total - jnp.float32(n_pad) * (-0.5 * c_pad * c_pad)
    return total / jnp.float32(n)


def _reference(pred, target, delta):
    r = jnp.abs(pred.astype(jnp.float32) - target.astype(jnp.float32))
    loss = jnp.where(r < delta, 0.5 * r * r, delta * (r - 0.5 * delta))
    return jnp.mean(loss)


if __name__ == "__main__":
    # Deterministic "parameter" init, mirroring nn.Parameter(torch.tensor(initial_delta))
    initial_delta = 1.0

    key = jax.random.PRNGKey(0)
    k1, k2, k3, k4, k5, k6 = jax.random.split(key, 6)

    # 1) 128-aligned NCHW-style input (2*4*16*16 = 2048 elems): zero-copy path.
    pred = jax.random.normal(k1, (2, 4, 16, 16), dtype=jnp.float32)
    target = jax.random.normal(k2, (2, 4, 16, 16), dtype=jnp.float32)
    loss = jax.block_until_ready(adaptive_huber_loss(pred, target, delta=initial_delta))
    ref = _reference(pred, target, initial_delta)
    assert jnp.allclose(loss, ref, rtol=1e-5, atol=1e-6), (loss, ref)

    # 2) Non-multiple-of-128 element count: exercises the tiny tail-pad path.
    pred_odd = jax.random.normal(k3, (3, 5, 7, 11), dtype=jnp.float32)
    target_odd = jax.random.normal(k4, (3, 5, 7, 11), dtype=jnp.float32)
    loss_odd = jax.block_until_ready(
        adaptive_huber_loss(pred_odd, target_odd, delta=initial_delta))
    ref_odd = _reference(pred_odd, target_odd, initial_delta)
    assert jnp.allclose(loss_odd, ref_odd, rtol=1e-5, atol=1e-6), (loss_odd, ref_odd)

    # 3) Multi-block grid with a ragged last block: exercises the in-kernel row mask.
    pred_big = jax.random.normal(k5, (299, 130), dtype=jnp.float32)
    target_big = jax.random.normal(k6, (299, 130), dtype=jnp.float32)
    loss_big = jax.block_until_ready(
        adaptive_huber_loss(pred_big, target_big, delta=0.75, block_rows=64))
    ref_big = _reference(pred_big, target_big, 0.75)
    assert jnp.allclose(loss_big, ref_big, rtol=1e-4, atol=1e-6), (loss_big, ref_big)

    print("KERNEL_OK")
</pallas_src>

<mosaic_0001>
module attributes {stable_mosaic.version = 11 : i64} {
  func.func @kernel(%arg0: i32, %arg1: memref<1xf32, #tpu.memory_space<smem>>, %arg2: memref<16x128xf32, #tpu.memory_space<vmem>>, %arg3: memref<16x128xf32, #tpu.memory_space<vmem>>, %arg4: memref<8x128xf32, #tpu.memory_space<vmem>>) attributes {dimension_semantics = [#tpu.dimension_semantics<parallel>], iteration_bounds = array<i64: 1>, scalar_prefetch = 0 : i64, scratch_operands = 0 : i64, tpu.core_type = #tpu.core_type<tc>, window_params = [{transform_indices = @transform_0, window_bounds = array<i64: 1>}, {transform_indices = @transform_1, window_bounds = array<i64: 16, 128>}, {transform_indices = @transform_2, window_bounds = array<i64: 16, 128>}, {transform_indices = @transform_3, window_bounds = array<i64: 8, 128>}]} {
    %c0 = arith.constant 0 : index
    %0 = memref.load %arg1[%c0] : memref<1xf32, #tpu.memory_space<smem>>
    %c0_0 = arith.constant 0 : index
    %c0_1 = arith.constant 0 : index
    %1 = vector.load %arg2[%c0_0, %c0_1] : memref<16x128xf32, #tpu.memory_space<vmem>>, vector<16x128xf32>
    %c0_2 = arith.constant 0 : index
    %c0_3 = arith.constant 0 : index
    %2 = vector.load %arg3[%c0_2, %c0_3] : memref<16x128xf32, #tpu.memory_space<vmem>>, vector<16x128xf32>
    %3 = arith.subf %1, %2 : vector<16x128xf32>
    %4 = math.absf %3 : vector<16x128xf32>
    %5 = vector.broadcast %0 : f32 to vector<16x128xf32>
    %6 = arith.minimumf %4, %5 : vector<16x128xf32>
    %cst = arith.constant 5.000000e-01 : f32
    %7 = vector.broadcast %cst : f32 to vector<16x128xf32>
    %8 = arith.mulf %7, %6 : vector<16x128xf32>
    %9 = arith.subf %4, %8 : vector<16x128xf32>
    %10 = arith.mulf %6, %9 : vector<16x128xf32>
    %11 = vector.shape_cast %10 : vector<16x128xf32> to vector<2x8x128xf32>
    %cst_4 = arith.constant dense<0.000000e+00> : vector<8x128xf32>
    %12 = vector.multi_reduction <add>, %11, %cst_4 [0] : vector<2x8x128xf32> to vector<8x128xf32>
    %c0_5 = arith.constant 0 : index
    %c0_6 = arith.constant 0 : index
    %13 = vector.load %arg4[%c0_5, %c0_6] : memref<8x128xf32, #tpu.memory_space<vmem>>, vector<8x128xf32>
    tpu.vector_store %arg4[%c0_5, %c0_6], %12 {strides = array<i32>} : memref<8x128xf32, #tpu.memory_space<vmem>>, vector<8x128xf32>,
    return
  }
  func.func @transform_0(%arg0: i32) -> i32 {
    %c0_i32 = arith.constant 0 : i32
    %c0_i32_0 = arith.constant 0 : i32
    return %c0_i32 : i32
  }
  func.func @transform_1(%arg0: i32) -> (i32, i32) {
    %c0_i32 = arith.constant 0 : i32
    %c0_i32_0 = arith.constant 0 : i32
    return %arg0, %c0_i32 : i32, i32
  }
  func.func @transform_2(%arg0: i32) -> (i32, i32) {
    %c0_i32 = arith.constant 0 : i32
    %c0_i32_0 = arith.constant 0 : i32
    return %arg0, %c0_i32 : i32, i32
  }
  func.func @transform_3(%arg0: i32) -> (i32, i32) {
    %c0_i32 = arith.constant 0 : i32
    %c0_i32_0 = arith.constant 0 : i32
    return %arg0, %c0_i32 : i32, i32
  }
}

</mosaic_0001>

<bundles_post_ra>
// kernel: tpu_custom_call.1
= control target key start
LH: loop header
LB: loop body
LE: loop exit
PB: predicated region body
PF: predicated region fallthrough
CT: control target
= control target key end

     0   :  { %9 = vsyncpa [#allocation4], 0  ;;  %s221_s0 = inlined_call_operand.<no memory space> [shape: f32[1], index: 0, kind: input, shape index: {}]   ;;  %s222_s1 = inlined_call_operand.hbm [shape: f32[16,128], index: 1, kind: input, shape index: {}]   ;;  %s223_s2 = inlined_call_operand.hbm [shape: f32[16,128], index: 2, kind: input, shape index: {}]   ;;  %s224_s3 = inlined_call_operand.hbm [shape: f32[8,128], index: 3, kind: output, shape index: {}]  }
   0x1   :  { %10 = vsyncpa [#allocation7], 0 }
   0x2   :  { %11 = vsyncpa [#allocation5], 0  ;;  %s157_s12 = smov [#allocation3]   ;;  %s85_s16 = scalar_lea.hbm %s222_s1, 256 }
   0x3   :  { %s19_s13 = sshll.u32 %s157_s12, 4  ;;  %p86_p0 = scmp.ne.s32.totalorder %s222_s1, %s85_s16  ;;  %s20_s13 = int_to_ptr.vmem [resolvable:$true] %s19_s13 }
   0x4   :  { %p89_p1 = scmp.lt.u32.totalorder %s85_s16, %s222_s1 }
   0x6   :  { %p91_p2 = pnand %p89_p1, %p86_p0 }
   0x8   :  { %94 = shalt.err (!%p91_p2)
}
   0x9   :  { %s95_s21 = scalar_lea.vmem %s20_s13, 256  ;;  %p100_p4 = scmp.lt.s32.totalorder %s20_s13, %s20_s13 }
   0xa   :  { %p96_p3 = scmp.ne.s32.totalorder %s20_s13, %s95_s21  ;;  %p101_p5 = scmp.lt.s32.totalorder %s95_s21, %s95_s21 }
   0xc   :  { %p102_p6 = por %p101_p5, %p100_p4 }
   0xe   :  { %p103_p7 = pnand %p102_p6, %p96_p3 }
  0x10   :  { %106 = shalt.err (!%p103_p7)
}
  0x11   :  { %s158_s22 = smov 128   ;;  %s159_s23 = smov 8  }
  0x12   :  { %25 = dma.hbm_to_vmem [thread:$0]  %s222_s1, 256, %s20_s13, [#allocation4], %s158_s22, %s158_s22, %s159_s23  }
  0x13   :  { %s160_s26 = smov [#allocation6]   ;;  %s107_s30 = scalar_lea.hbm %s223_s2, 256 }
  0x14   :  { %s31_s27 = sshll.u32 %s160_s26, 4  ;;  %p108_p8 = scmp.ne.s32.totalorder %s223_s2, %s107_s30  ;;  %s32_s27 = int_to_ptr.vmem [resolvable:$true] %s31_s27 }
  0x15   :  { %p111_p9 = scmp.lt.u32.totalorder %s107_s30, %s223_s2 }
  0x17   :  { %p113_p10 = pnand %p111_p9, %p108_p8 }
  0x19   :  { %116 = shalt.err (!%p113_p10)
}
  0x1a   :  { %s117_s8 = scalar_lea.vmem %s32_s27, 256  ;;  %p122_p12 = scmp.lt.s32.totalorder %s32_s27, %s32_s27 }
  0x1b   :  { %p118_p11 = scmp.ne.s32.totalorder %s32_s27, %s117_s8  ;;  %p123_p13 = scmp.lt.s32.totalorder %s117_s8, %s117_s8 }
  0x1d   :  { %p124_p0 = por %p123_p13, %p122_p12 }
  0x1f   :  { %p125_p1 = pnand %p124_p0, %p118_p11 }
  0x21   :  { %128 = shalt.err (!%p125_p1)
}
  0x22   :  { %37 = dma.hbm_to_vmem [thread:$0]  %s223_s2, 256, %s32_s27, [#allocation7], %s158_s22, %s158_s22, %s159_s23  }
  0x23   :  { %151 = dma.done.wait [#allocation4], 256  }
  0x24   :  { %152 = vsyncadd [#allocation4], 4294967040 }
  0x25   :  { %153 = dma.done.wait [#allocation7], 256  }
  0x26   :  { %154 = vsyncadd [#allocation7], 4294967040  ;;  %v45_v0 = vld [vmem:[#allocation3] sm:$0xff]  ;;  %v46_v1 = vld [vmem:[#allocation3 + $0x8] sm:$0xff]  ;;  %v53_v6 = vstv %s221_s0  ;;  %s161_s2 = smov [#allocation8]  }
  0x27   :  { %v47_v2 = vld [vmem:[#allocation6] sm:$0xff]  ;;  %v48_v3 = vld [vmem:[#allocation6 + $0x8] sm:$0xff]  ;;  %s70_s12 = sshll.u32 %s161_s2, 4  ;;  %s71_s12 = int_to_ptr.vmem [resolvable:$true] %s70_s12 }
  0x28   :  { %v49_v4 = vsub.f32 %v45_v0, %v47_v2  ;;  %v50_v5 = vsub.f32 %v46_v1, %v48_v3  ;;  %s129_s13 = scalar_lea.vmem %s71_s12, 128  ;;  %p134_p3 = scmp.lt.s32.totalorder %s71_s12, %s71_s12 }
  0x29   :  { %p130_p2 = scmp.ne.s32.totalorder %s71_s12, %s129_s13  ;;  %p135_p4 = scmp.lt.s32.totalorder %s129_s13, %s129_s13 }
  0x2a   :  { %v51_v7 = vand.u32 2147483647, %v49_v4  ;;  %v52_v8 = vand.u32 2147483647, %v50_v5 }
  0x2b   :  { %p136_p5 = por %p135_p4, %p134_p3 }
  0x2c   :  { %v54_v9 = vmin.f32 %v51_v7, %v53_v6  ;;  %v55_v10 = vmin.f32 %v52_v8, %v53_v6 }
  0x2d   :  { %p137_p6 = pnand %p136_p5, %p130_p2 }
  0x2e   :  { %v56_v11 = vmul.f32 0.5, %v54_v9  ;;  %v57_v12 = vmul.f32 0.5, %v55_v10 }
  0x30   :  { %v58_v13 = vsub.f32 %v51_v7, %v56_v11  ;;  %v59_v14 = vsub.f32 %v52_v8, %v57_v12 }
  0x32   :  { %v60_v15 = vmul.f32 %v58_v13, %v54_v9  ;;  %v61_v16 = vmul.f32 %v59_v14, %v55_v10 }
  0x34   :  { %v62_v17 = vadd.f32 %v61_v16, %v60_v15 }
  0x36   :  { %63 = vst [vmem:[#allocation8] sm:$0xff] %v62_v17 }
  0x37   :  { %140 = shalt.err (!%p137_p6)
}
  0x38   :  { %s141_s15 = scalar_lea.hbm %s224_s3, 128 }
  0x39   :  { %p142_p7 = scmp.ne.s32.totalorder %s224_s3, %s141_s15  ;;  %p145_p8 = scmp.lt.u32.totalorder %s141_s15, %s224_s3 }
  0x3b   :  { %p147_p9 = pnand %p145_p8, %p142_p7 }
  0x3d   :  { %150 = shalt.err (!%p147_p9)
}
  0x3e   :  { %73 = dma.vmem_to_hbm [thread:$0]  %s71_s12, 128, %s224_s3, [#allocation5]  }
  0x3f   :  { %155 = dma.done.wait [#allocation5], 128  }
  0x40   :  { %156 = vsyncadd [#allocation5], 4294967168 }
  0x41   :  { %77 = vsyncpa [#allocation4], 1 }
  0x42   :  { %78 = vsyncpa [#allocation7], 1 }
  0x43   :  { %79 = vsyncpa [#allocation5], 1 }

</bundles_post_ra>
